<compile_context>
chip_gen: v7x
topology: tpu7x:2x2x1
jax: 0.10.0
libtpu: 0.0.40
codegen_flags: <defaults>
</compile_context>

<pallas_src>
import functools

import jax
import jax.numpy as jnp
from jax.experimental import pallas as pl
from jax.experimental.pallas import tpu as pltpu


def _se_kernel(x_ref, w1t_ref, b1_ref, w2t_ref, b2_ref, o_ref, *, inv_hw):
    """One block of Nb batch elements. x_ref / o_ref: (Nb, C, HW_pad)."""
    # Squeeze: adaptive_avg_pool2d(x, (1, 1)). Accumulate the sum in f32 and
    # scale by 1/true_HW so zero-padded lanes do not skew the mean. No full
    # f32 copy of the tile is materialized.
    pooled = jnp.sum(x_ref[...], axis=-1, dtype=jnp.float32) * inv_hw    # (Nb, C)

    # linear1 (1x1 conv): pooled @ W1^T + b1, with W1^T pre-computed (C, R).
    h = jnp.dot(pooled, w1t_ref[...], preferred_element_type=jnp.float32)
    h = h + b1_ref[...]                                                  # (Nb, R)

    # Swish activation: h * sigmoid(h)
    h = h * jax.nn.sigmoid(h)

    # linear2 (1x1 conv): h @ W2^T + b2, with W2^T pre-computed (R, C).
    s = jnp.dot(h, w2t_ref[...], preferred_element_type=jnp.float32)
    s = s + b2_ref[...]                                                  # (Nb, C)

    # Excitation gate. Cast once, broadcast once, scale at the store — the
    # full tile never exists in f32 when the input is narrower.
    se = jax.nn.sigmoid(s).astype(o_ref.dtype)                           # (Nb, C)
    o_ref[...] = x_ref[...] * se[:, :, None]


def _choose_batch_block(n, c, hw_pad, itemsize,
                        budget_bytes=4 << 20, min_grid=8):
    """Pick the batch-block size Nb: largest divisor of N whose x tile stays
    under `budget_bytes`, preferring to keep >= min_grid grid steps (megacore
    sharding + pipeline depth) when N is large enough to allow it."""
    per_image = max(1, c * hw_pad * itemsize)
    max_nb = max(1, budget_bytes // per_image)
    divisors = [d for d in range(1, n + 1) if n % d == 0 and d <= max_nb]
    if not divisors:
        return 1
    deep = [d for d in divisors if n // d >= min_grid]
    return max(deep) if deep else max(divisors)


def se_block(x_nchw, w1, b1, w2, b2, *, vmem_limit_bytes=48 * 1024 * 1024):
    """SEBlock forward.
    x_nchw: (N, C, H, W); w1: (R, C); b1: (R,); w2: (C, R); b2: (C,).
    Returns (N, C, H, W)."""
    N, C, H, W = x_nchw.shape
    R = w1.shape[0]
    HW = H * W
    HW_pad = ((HW + 127) // 128) * 128

    # Flatten spatial dims; zero-pad the lane axis to a multiple of 128 so
    # stores are unmasked/lane-dense. The mean divides by the true HW so the
    # zero padding does not change the pooled value.
    x_flat = x_nchw.reshape(N, C, HW)
    if HW_pad != HW:
        x_flat = jnp.pad(x_flat, ((0, 0), (0, 0), (0, HW_pad - HW)))

    # Pre-transpose the tiny weights once in the wrapper (no in-kernel XLU
    # work); keep the small params in f32 for the f32 accumulation path.
    w1t = w1.T.astype(jnp.float32)            # (C, R)
    w2t = w2.T.astype(jnp.float32)            # (R, C)
    b1_2d = b1.reshape(1, R).astype(jnp.float32)
    b2_2d = b2.reshape(1, C).astype(jnp.float32)

    itemsize = jnp.dtype(x_nchw.dtype).itemsize
    Nb = _choose_batch_block(N, C, HW_pad, itemsize)
    grid = (N // Nb,)

    kernel = functools.partial(_se_kernel, inv_hw=1.0 / float(HW))

    out_flat = pl.pallas_call(
        kernel,
        out_shape=jax.ShapeDtypeStruct((N, C, HW_pad), x_nchw.dtype),
        grid_spec=pltpu.PrefetchScalarGridSpec(
            num_scalar_prefetch=0,
            grid=grid,
            in_specs=[
                pl.BlockSpec((Nb, C, HW_pad), lambda n: (n, 0, 0)),  # x block
                pl.BlockSpec((C, R), lambda n: (0, 0)),              # W1^T (resident)
                pl.BlockSpec((1, R), lambda n: (0, 0)),              # b1
                pl.BlockSpec((R, C), lambda n: (0, 0)),              # W2^T (resident)
                pl.BlockSpec((1, C), lambda n: (0, 0)),              # b2
            ],
            out_specs=pl.BlockSpec((Nb, C, HW_pad), lambda n: (n, 0, 0)),
        ),
        compiler_params=pltpu.CompilerParams(
            dimension_semantics=("parallel",),
            vmem_limit_bytes=vmem_limit_bytes,
        ),
    )(x_flat, w1t, b1_2d, w2t, b2_2d)

    if HW_pad != HW:
        out_flat = out_flat[:, :, :HW]
    return out_flat.reshape(N, C, H, W)


def reference_se_block(x, w1, b1, w2, b2):
    """Pure-JAX reference mirroring the PyTorch SEBlock forward."""
    pooled = jnp.mean(x, axis=(2, 3))                         # (N, C)
    h = pooled @ w1.T + b1                                    # (N, R)
    h = h * jax.nn.sigmoid(h)                                 # Swish
    s = h @ w2.T + b2                                         # (N, C)
    se = jax.nn.sigmoid(s)                                    # (N, C)
    return x * se[:, :, None, None]


if __name__ == "__main__":
    key = jax.random.PRNGKey(0)
    k_x, k_w1, k_b1, k_w2, k_b2 = jax.random.split(key, 5)

    # Small shapes consistent with SEBlock(in_planes=4, reduced_dim=2)
    N, C, H, W = 2, 4, 16, 16
    R = 2

    x = jax.random.normal(k_x, (N, C, H, W), dtype=jnp.float32)
    # Deterministic synthetic parameters (nn.Conv2d 1x1 kernels, squeezed).
    w1 = jax.random.normal(k_w1, (R, C), dtype=jnp.float32) * 0.1   # linear1.weight
    b1 = jax.random.normal(k_b1, (R,), dtype=jnp.float32) * 0.1     # linear1.bias
    w2 = jax.random.normal(k_w2, (C, R), dtype=jnp.float32) * 0.1   # linear2.weight
    b2 = jax.random.normal(k_b2, (C,), dtype=jnp.float32) * 0.1     # linear2.bias

    out = se_block(x, w1, b1, w2, b2)
    out = jax.block_until_ready(out)

    ref = reference_se_block(x, w1, b1, w2, b2)
    assert out.shape == ref.shape == (N, C, H, W)
    assert jnp.allclose(out, ref, atol=1e-5, rtol=1e-5), (
        f"max abs err = {jnp.max(jnp.abs(out - ref))}")

    print("KERNEL_OK")
</pallas_src>

<mosaic_0001>
module attributes {stable_mosaic.version = 11 : i64} {
  func.func @_se_kernel(%arg0: i32, %arg1: memref<2x4x256xf32, #tpu.memory_space<vmem>>, %arg2: memref<4x2xf32, #tpu.memory_space<vmem>>, %arg3: memref<1x2xf32, #tpu.memory_space<vmem>>, %arg4: memref<2x4xf32, #tpu.memory_space<vmem>>, %arg5: memref<1x4xf32, #tpu.memory_space<vmem>>, %arg6: memref<2x4x256xf32, #tpu.memory_space<vmem>>) attributes {dimension_semantics = [#tpu.dimension_semantics<parallel>], iteration_bounds = array<i64: 1>, scalar_prefetch = 0 : i64, scratch_operands = 0 : i64, tpu.core_type = #tpu.core_type<tc>, window_params = [{transform_indices = @transform_0, window_bounds = array<i64: 2, 4, 256>}, {pipeline_mode = #tpu.pipeline_mode<synchronous>, transform_indices = @transform_1, window_bounds = array<i64: 4, 2>}, {pipeline_mode = #tpu.pipeline_mode<synchronous>, transform_indices = @transform_2, window_bounds = array<i64: 1, 2>}, {pipeline_mode = #tpu.pipeline_mode<synchronous>, transform_indices = @transform_3, window_bounds = array<i64: 2, 4>}, {pipeline_mode = #tpu.pipeline_mode<synchronous>, transform_indices = @transform_4, window_bounds = array<i64: 1, 4>}, {transform_indices = @transform_5, window_bounds = array<i64: 2, 4, 256>}]} {
    %c0 = arith.constant 0 : index
    %c0_0 = arith.constant 0 : index
    %c0_1 = arith.constant 0 : index
    %0 = vector.load %arg1[%c0, %c0_0, %c0_1] : memref<2x4x256xf32, #tpu.memory_space<vmem>>, vector<2x4x256xf32>
    %cst = arith.constant dense<0.000000e+00> : vector<2x4xf32>
    %1 = vector.multi_reduction <add>, %0, %cst [2] : vector<2x4x256xf32> to vector<2x4xf32>
    %cst_2 = arith.constant 3.906250e-03 : f32
    %2 = vector.broadcast %cst_2 : f32 to vector<2x4xf32>
    %3 = arith.mulf %1, %2 : vector<2x4xf32>
    %c0_3 = arith.constant 0 : index
    %c0_4 = arith.constant 0 : index
    %4 = vector.load %arg2[%c0_3, %c0_4] : memref<4x2xf32, #tpu.memory_space<vmem>>, vector<4x2xf32>
    %cst_5 = arith.constant dense<0.000000e+00> : vector<2x2xf32>
    %5 = tpu.matmul %3, %4, %cst_5 {dimension_numbers = #tpu.dot_dimension_numbers<[1], [0], [0], [1], [0, 0, 1, 1], [], []>} : vector<2x4xf32>, vector<4x2xf32>, vector<2x2xf32> -> vector<2x2xf32>
    %c0_6 = arith.constant 0 : index
    %c0_7 = arith.constant 0 : index
    %6 = vector.load %arg3[%c0_6, %c0_7] : memref<1x2xf32, #tpu.memory_space<vmem>>, vector<1x2xf32>
    %7 = vector.broadcast %6 : vector<1x2xf32> to vector<2x2xf32>
    %8 = arith.addf %5, %7 : vector<2x2xf32>
    %9 = arith.negf %8 : vector<2x2xf32>
    %10 = math.exp %9 : vector<2x2xf32>
    %cst_8 = arith.constant 1.000000e+00 : f32
    %11 = vector.broadcast %cst_8 : f32 to vector<2x2xf32>
    %12 = arith.addf %11, %10 : vector<2x2xf32>
    %13 = arith.divf %11, %12 : vector<2x2xf32>
    %14 = arith.mulf %8, %13 : vector<2x2xf32>
    %c0_9 = arith.constant 0 : index
    %c0_10 = arith.constant 0 : index
    %15 = vector.load %arg4[%c0_9, %c0_10] : memref<2x4xf32, #tpu.memory_space<vmem>>, vector<2x4xf32>
    %cst_11 = arith.constant dense<0.000000e+00> : vector<2x4xf32>
    %16 = tpu.matmul %14, %15, %cst_11 {dimension_numbers = #tpu.dot_dimension_numbers<[1], [0], [0], [1], [0, 0, 1, 1], [], []>} : vector<2x2xf32>, vector<2x4xf32>, vector<2x4xf32> -> vector<2x4xf32>
    %c0_12 = arith.constant 0 : index
    %c0_13 = arith.constant 0 : index
    %17 = vector.load %arg5[%c0_12, %c0_13] : memref<1x4xf32, #tpu.memory_space<vmem>>, vector<1x4xf32>
    %18 = vector.broadcast %17 : vector<1x4xf32> to vector<2x4xf32>
    %19 = arith.addf %16, %18 : vector<2x4xf32>
    %20 = arith.negf %19 : vector<2x4xf32>
    %21 = math.exp %20 : vector<2x4xf32>
    %cst_14 = arith.constant 1.000000e+00 : f32
    %22 = vector.broadcast %cst_14 : f32 to vector<2x4xf32>
    %23 = arith.addf %22, %21 : vector<2x4xf32>
    %24 = arith.divf %22, %23 : vector<2x4xf32>
    %c0_15 = arith.constant 0 : index
    %c0_16 = arith.constant 0 : index
    %c0_17 = arith.constant 0 : index
    %25 = vector.load %arg1[%c0_15, %c0_16, %c0_17] : memref<2x4x256xf32, #tpu.memory_space<vmem>>, vector<2x4x256xf32>
    %26 = vector.shape_cast %24 : vector<2x4xf32> to vector<2x4x1xf32>
    %27 = vector.broadcast %26 : vector<2x4x1xf32> to vector<2x4x256xf32>
    %28 = arith.mulf %25, %27 : vector<2x4x256xf32>
    %c0_18 = arith.constant 0 : index
    %c0_19 = arith.constant 0 : index
    %c0_20 = arith.constant 0 : index
    %29 = vector.load %arg6[%c0_18, %c0_19, %c0_20] : memref<2x4x256xf32, #tpu.memory_space<vmem>>, vector<2x4x256xf32>
    tpu.vector_store %arg6[%c0_18, %c0_19, %c0_20], %28 {strides = array<i32>} : memref<2x4x256xf32, #tpu.memory_space<vmem>>, vector<2x4x256xf32>,
    return
  }
  func.func @transform_0(%arg0: i32) -> (i32, i32, i32) {
    %c0_i32 = arith.constant 0 : i32
    %c0_i32_0 = arith.constant 0 : i32
    %c0_i32_1 = arith.constant 0 : i32
    return %arg0, %c0_i32, %c0_i32_0 : i32, i32, i32
  }
  func.func @transform_1(%arg0: i32) -> (i32, i32) {
    %c0_i32 = arith.constant 0 : i32
    %c0_i32_0 = arith.constant 0 : i32
    %c0_i32_1 = arith.constant 0 : i32
    return %c0_i32, %c0_i32_0 : i32, i32
  }
  func.func @transform_2(%arg0: i32) -> (i32, i32) {
    %c0_i32 = arith.constant 0 : i32
    %c0_i32_0 = arith.constant 0 : i32
    %c0_i32_1 = arith.constant 0 : i32
    return %c0_i32, %c0_i32_0 : i32, i32
  }
  func.func @transform_3(%arg0: i32) -> (i32, i32) {
    %c0_i32 = arith.constant 0 : i32
    %c0_i32_0 = arith.constant 0 : i32
    %c0_i32_1 = arith.constant 0 : i32
    return %c0_i32, %c0_i32_0 : i32, i32
  }
  func.func @transform_4(%arg0: i32) -> (i32, i32) {
    %c0_i32 = arith.constant 0 : i32
    %c0_i32_0 = arith.constant 0 : i32
    %c0_i32_1 = arith.constant 0 : i32
    return %c0_i32, %c0_i32_0 : i32, i32
  }
  func.func @transform_5(%arg0: i32) -> (i32, i32, i32) {
    %c0_i32 = arith.constant 0 : i32
    %c0_i32_0 = arith.constant 0 : i32
    %c0_i32_1 = arith.constant 0 : i32
    return %arg0, %c0_i32, %c0_i32_0 : i32, i32, i32
  }
}

</mosaic_0001>

<bundles_post_ra>
// kernel: tpu_custom_call.1
= control target key start
LH: loop header
LB: loop body
LE: loop exit
PB: predicated region body
PF: predicated region fallthrough
CT: control target
= control target key end

     0   :  { %10 = vsyncpa [#allocation3], 0  ;;  %s489_s0 = inlined_call_operand.hbm [shape: f32[2,4,256], index: 0, kind: input, shape index: {}]   ;;  %s490_s1 = inlined_call_operand.vmem [shape: f32[4,2], index: 1, kind: input, shape index: {}]   ;;  %s491_s2 = inlined_call_operand.vmem [shape: f32[1,2], index: 2, kind: input, shape index: {}]   ;;  %s492_s3 = inlined_call_operand.vmem [shape: f32[2,4], index: 3, kind: input, shape index: {}]   ;;  %s493_s4 = inlined_call_operand.vmem [shape: f32[1,4], index: 4, kind: input, shape index: {}]   ;;  %s494_s5 = inlined_call_operand.hbm [shape: f32[2,4,256], index: 5, kind: output, shape index: {}]  }
   0x1   :  { %11 = vsyncpa [#allocation4], 0  ;;  %s393_s18 = smov [#allocation2]   ;;  %s345_s22 = scalar_lea.hbm %s489_s0, 256 }
   0x2   :  { %s17_s19 = sshll.u32 %s393_s18, 4  ;;  %p346_p0 = scmp.ne.s32.totalorder %s489_s0, %s345_s22  ;;  %s18_s19 = int_to_ptr.vmem [resolvable:$true] %s17_s19 }
   0x3   :  { %p349_p1 = scmp.lt.u32.totalorder %s345_s22, %s489_s0 }
   0x5   :  { %p351_p2 = pnand %p349_p1, %p346_p0 }
   0x7   :  { %354 = shalt.err (!%p351_p2)
}
   0x8   :  { %s355_s27 = scalar_lea.vmem %s18_s19, 256  ;;  %p360_p4 = scmp.lt.s32.totalorder %s18_s19, %s18_s19 }
   0x9   :  { %p356_p3 = scmp.ne.s32.totalorder %s18_s19, %s355_s27  ;;  %p361_p5 = scmp.lt.s32.totalorder %s355_s27, %s355_s27 }
   0xb   :  { %p362_p6 = por %p361_p5, %p360_p4 }
   0xd   :  { %p363_p7 = pnand %p362_p6, %p356_p3 }
   0xf   :  { %366 = shalt.err (!%p363_p7)
}
  0x10   :  { %s394_s28 = smov 128   ;;  %s395_s29 = smov 8  }
  0x11   :  { %23 = dma.hbm_to_vmem [thread:$0]  %s489_s0, 256, %s18_s19, [#allocation3], %s394_s28, %s394_s28, %s395_s29  }
  0x12   :  { %389 = dma.done.wait [#allocation3], 256  }
  0x13   :  { %390 = vsyncadd [#allocation3], 4294967040  ;;  %vm43_vm0 = vcmask 1043456   ;;  %v445_v0 = vld [vmem:[#allocation2] sm:$0xff]  ;;  %v447_v1 = vld [vmem:[#allocation2 + $0x8] sm:$0xff]  ;;  %v396_v11 = vmov 0.0   ;;  %v66_v12 = vlaneseq }
  0x14   :  { %v39_v2 = vcombine.high %v445_v0, %v445_v0  ;;  %v44_v3 = vsel %vm43_vm0, %v445_v0, 0.0  ;;  %v40_v4 = vcombine.high %v447_v1, %v447_v1  ;;  %v49_v6 = vsel %vm43_vm0, %v447_v1, 0.0  ;;  %v56_v10 = vld [vmem:[%s490_s1] sm:$0xf]  ;;  %318 = vmatprep.subr.mxu0 %v396_v11  ;;  %323 = vmatprep.subr.mxu1 %v396_v11 }
  0x15   :  { %vm397_vm1 = vmmov 0   ;;  %319 = vmatpush3.msk.msra.mxu0 %vm43_vm0, %v56_v10  ;;  %v67_v13 = vand.u32 127, %v66_v12  ;;  %v69_v14 = vshrl.u32 %v66_v12, 7  ;;  %vm76_vm2 = vcmask 1041409   ;;  %v161_v23 = vld [vmem:[%s492_s3] sm:$0x3] }
  0x16   :  { %v45_v5 = vsel %vm43_vm0, %v39_v2, 0.0  ;;  %v50_v7 = vsel %vm43_vm0, %v40_v4, 0.0  ;;  %320 = vmatprep.mubr.msk.f32.mxu0 %vm397_vm1, %v396_v11  ;;  %325 = vmatprep.mubr.msk.f32.mxu1 %vm397_vm1, %v396_v11  ;;  %vm78_vm3 = vcmask 31744   ;;  %vm173_vm4 = vcmask 1041408   ;;  %v306_v24 = vld [vmem:[%s491_s2] ss:$0 sm:$0xff] }
  0x17   :  { %v46_v8 = vadd.f32 %v45_v5, %v44_v3  ;;  %v51_v9 = vadd.f32 %v50_v7, %v49_v6  ;;  %v70_v16 = vsub.s32 %v67_v13, %v69_v14  ;;  %324 = vmatpush3.msk.msra.mxu1 %vm173_vm4, %v161_v23  ;;  %vm169_vm5 = vcmask 15360   ;;  %v310_v33 = vld [vmem:[%s493_s4] ss:$0 sm:$0xff]  ;;  %s399_s2 = smov [#allocation5]  }
  0x18   :  { %v255_v40 = vsub.s32 0, %v69_v14  ;;  %v262_v43 = vsub.s32 1, %v69_v14  ;;  %v398_v45 = vmov 839922192   ;;  %s294_s4 = sshll.u32 %s399_s2, 4  ;;  %s295_s4 = int_to_ptr.vmem [resolvable:$true] %s294_s4 }
  0x19   :  { %47 = vadd.xlane.f32.xlu0 %v46_v8  ;;  %v270_v46 = vunpack.c.l.s4 %v398_v45  ;;  %s367_s12 = scalar_lea.vmem %s295_s4, 256  ;;  %p372_p9 = scmp.lt.s32.totalorder %s295_s4, %s295_s4 }
  0x1a   :  { %p368_p8 = scmp.ne.s32.totalorder %s295_s4, %s367_s12  ;;  %p373_p10 = scmp.lt.s32.totalorder %s367_s12, %s367_s12 }
  0x1b   :  { %v271_v47 = vunpack.c.0.s8 %v270_v46 }
  0x1c   :  { %p374_p11 = por %p373_p10, %p372_p9 }
  0x1d   :  { %52 = vadd.xlane.f32.xlu0 %v51_v9  ;;  %v274_v48 = vsub.s32 %v271_v47, %v69_v14 }
  0x1e   :  { %p375_p12 = pnand %p374_p11, %p368_p8 }
  0xa6   :  { %v48_v15 = vpop.xlane.xlu0 %47 }
  0xa7   :  { %v54_v17 = vmul.f32 0.00390625, %v48_v15 }
  0xa9   :  { %v71_v20 = vrot.slane %v54_v17, %v70_v16 }
  0xaa   :  { %v53_v18 = vpop.xlane.xlu0 %52 }
  0xab   :  { %v55_v19 = vmul.f32 0.00390625, %v53_v18 }
  0xad   :  { %v75_v21 = vrot.slane %v55_v19, %v70_v16 }
  0xaf   :  { %v77_v22 = vsel %vm76_vm2, %v75_v21, %v71_v20 }
  0xb0   :  { %321 = vmatmul.mubr.msk.f32.vlgmr.msra.gmra.mrb[0].mxu0 %vm78_vm3, %v77_v22 }
 0x183   :  { %v150_v25 = vpop.f32.mrb[0].mxu0 }
 0x184   :  { %v151_v26 = vadd.f32 %v306_v24, %v150_v25  ;;  %v322_v27 = vpop.f32.mrb[1].mxu0 }
 0x186   :  { %v309_v28 = vmul.f32 -1.442695, %v151_v26 }
 0x188   :  { %337 = vpow2.f32 %v309_v28 }
 0x192   :  { %v338_v29 = vpop.eup %337 }
 0x193   :  { %v157_v30 = vadd.f32 1.0, %v338_v29 }
 0x195   :  { %339 = vrcp.f32 %v157_v30 }
 0x19f   :  { %v340_v31 = vpop.eup %339 }
 0x1a0   :  { %v160_v32 = vmul.f32 %v340_v31, %v151_v26 }
 0x1a2   :  { %326 = vmatmul.mubr.msk.f32.vlgmr.msra.gmra.mrb[0].mxu1 %vm169_vm5, %v160_v32 }
 0x275   :  { %v243_v34 = vpop.f32.mrb[0].mxu1 }
 0x276   :  { %v244_v35 = vadd.f32 %v310_v33, %v243_v34  ;;  %v327_v36 = vpop.f32.mrb[1].mxu1 }
 0x278   :  { %v313_v37 = vmul.f32 -1.442695, %v244_v35 }
 0x27a   :  { %341 = vpow2.f32 %v313_v37 }
 0x284   :  { %v342_v38 = vpop.eup %341 }
 0x285   :  { %v250_v39 = vadd.f32 1.0, %v342_v38 }
 0x287   :  { %343 = vrcp.f32 %v250_v39 }
 0x291   :  { %v344_v41 = vpop.eup %343 }
 0x292   :  { %v256_v42 = vrot.slane %v344_v41, %v255_v40  ;;  %v263_v44 = vrot.slane %v344_v41, %v262_v43 }
 0x294   :  { %258 = vbcast.lane.b32.xlu1 %v256_v42, 256 }
 0x298   :  { %265 = vbcast.lane.b32.xlu1 %v263_v44, 256 }
 0x306   :  { %v259_v49 = vpop.permute.xlu1 %258 }
 0x307   :  { %v275_v50 = vrot.slane %v259_v49, %v274_v48 }
 0x309   :  { %v285_v51 = vmul.f32 %v275_v50, %v445_v0 }
 0x30a   :  { %v266_v52 = vpop.permute.xlu1 %265 }
 0x30b   :  { %287 = vst [vmem:[#allocation5] sm:$0xff] %v285_v51  ;;  %v282_v53 = vrot.slane %v266_v52, %v274_v48 }
 0x30d   :  { %v286_v54 = vmul.f32 %v282_v53, %v447_v1 }
 0x30f   :  { %288 = vst [vmem:[#allocation5 + $0x8] sm:$0xff] %v286_v54 }
 0x310   :  { %378 = shalt.err (!%p375_p12)
}
 0x311   :  { %s379_s15 = scalar_lea.hbm %s494_s5, 256 }
 0x312   :  { %p380_p13 = scmp.ne.s32.totalorder %s494_s5, %s379_s15  ;;  %p383_p0 = scmp.lt.u32.totalorder %s379_s15, %s494_s5 }
 0x314   :  { %p385_p1 = pnand %p383_p0, %p380_p13 }
 0x316   :  { %388 = shalt.err (!%p385_p1)
}
 0x317   :  { %300 = dma.vmem_to_hbm [thread:$0]  %s295_s4, 256, %s494_s5, [#allocation4], %s394_s28, %s394_s28, %s395_s29  }
 0x318   :  { %391 = dma.done.wait [#allocation4], 256  }
 0x319   :  { %392 = vsyncadd [#allocation4], 4294967040 }
 0x31a   :  { %304 = vsyncpa [#allocation3], 1 }
 0x31b   :  { %305 = vsyncpa [#allocation4], 1 }

</bundles_post_ra>
